<compile_context>
chip_gen: v6e
topology: v6e:2x2x1
jax: 0.10.0
libtpu: 0.0.40
codegen_flags: <defaults>
</compile_context>

<pallas_src>
import math
import functools

import jax
import jax.numpy as jnp
from jax.experimental import pallas as pl
from jax.experimental.pallas import tpu as pltpu


def _round_up(x: int, m: int) -> int:
    return ((x + m - 1) // m) * m


# ----------------------------------------------------------------------------
# Batch tiling policy (bp = padded batch, tb = batch tile).
# ----------------------------------------------------------------------------
def _choose_tiling(B: int):
    bp0 = _round_up(B, 8)
    if bp0 < 64:
        return bp0, bp0                      # tiny: grid=(1,)
    if bp0 <= 1024:
        bp = _round_up(B, 16)
        return bp, bp // 2                   # 2 steps -> both v7x TCs busy
    if bp0 <= 2048:
        bp = _round_up(B, 512)
        return bp, bp // 2                   # tile in [768,1024], mult of 256
    bp = _round_up(B, 1024)
    return bp, 1024                          # large batch: 1024-row DMA tiles


# ----------------------------------------------------------------------------
# Fused MLP kernel.  refs = (x_ref, w0, b0, w1, b1, ..., o_ref).
# The batch tile may be processed in 256-row sub-chunks so the DMA tile size
# and the vreg working-set size are decoupled.
# ----------------------------------------------------------------------------
def _mlp_kernel(*refs, num_layers: int, row_chunk: int):
    x_ref = refs[0]
    o_ref = refs[-1]
    p_refs = refs[1:-1]

    tb = x_ref.shape[0]
    num_chunks = tb // row_chunk             # static

    def chain(h):
        for layer in range(num_layers):      # statically unrolled layer loop
            w = p_refs[2 * layer][...]       # (in_l, out_l)  pre-transposed
            b = p_refs[2 * layer + 1][...]   # (1, out_l)     f32
            h = jnp.dot(h.astype(w.dtype), w,
                        preferred_element_type=jnp.float32) + b
            if layer < num_layers - 1:       # ReLU on hidden layers only
                h = jnp.maximum(h, 0.0)
        return h

    if num_chunks <= 1:
        o_ref[...] = chain(x_ref[...]).astype(o_ref.dtype)
    else:
        @pl.loop(0, num_chunks)
        def _(c):
            r = pl.multiple_of(c * row_chunk, row_chunk)
            h = chain(x_ref[pl.ds(r, row_chunk), :])
            o_ref[pl.ds(r, row_chunk), :] = h.astype(o_ref.dtype)


# ----------------------------------------------------------------------------
# Parameters: PyTorch-Linear-like init, kernel-friendly layout (unpadded):
#   w: (in_features, out_features)   (already transposed)
#   b: (1, out_features)
# ----------------------------------------------------------------------------
def make_params(input_size, hidden_size, output_size, key):
    num_hidden_layers = max(0, int(math.log2(hidden_size)) - 4)
    num_layers = num_hidden_layers + 1

    params = []
    for layer in range(num_layers):
        in_f = hidden_size // 2 ** layer if layer > 0 else input_size
        out_f = (hidden_size // 2 ** (layer + 1)
                 if layer < num_hidden_layers else output_size)
        key, kw, kb = jax.random.split(key, 3)
        bound = 1.0 / math.sqrt(in_f)
        w = jax.random.uniform(kw, (in_f, out_f), dtype=jnp.float32,
                               minval=-bound, maxval=bound)
        b = jax.random.uniform(kb, (1, out_f), dtype=jnp.float32,
                               minval=-bound, maxval=bound)
        params.append((w, b))
    return params, num_hidden_layers


# ----------------------------------------------------------------------------
# Forward: one fused pallas_call for the whole network.
#   compute_dtype=None      -> f32 everywhere (bit-matches the f32 reference)
#   compute_dtype=bfloat16  -> bf16 x/weights, f32 accumulation + biases
# ----------------------------------------------------------------------------
def nn_model_forward(params, x, output_size, compute_dtype=None):
    num_layers = len(params)
    B, in_f = x.shape
    orig_dtype = x.dtype

    bp, tb = _choose_tiling(B)
    grid = (bp // tb,)

    # Output column layout: lane-dense 128-pad only for small batches (where
    # the masked-store penalty, not bandwidth, dominates); unpadded otherwise.
    pad_out = (bp <= 1024) and (output_size % 128 != 0)
    out_cols = _round_up(output_size, 128) if pad_out else output_size

    if bp != B:
        x = jnp.pad(x, ((0, bp - B), (0, 0)))
    if compute_dtype is not None:
        x = x.astype(compute_dtype)

    flat = []
    in_specs = [pl.BlockSpec((tb, in_f), lambda i: (i, 0))]
    for layer, (w, b) in enumerate(params):
        if layer == num_layers - 1 and pad_out and w.shape[1] != out_cols:
            pad = out_cols - w.shape[1]
            w = jnp.pad(w, ((0, 0), (0, pad)))     # padded cols are exactly 0
            b = jnp.pad(b, ((0, 0), (0, pad)))
        if compute_dtype is not None:
            w = w.astype(compute_dtype)            # biases stay f32
        flat.extend([w, b])
        in_specs.append(pl.BlockSpec(w.shape, lambda i: (0, 0)))
        in_specs.append(pl.BlockSpec(b.shape, lambda i: (0, 0)))
    out_specs = pl.BlockSpec((tb, out_cols), lambda i: (i, 0))

    # Decouple DMA tile from vreg working set for fat tiles.
    row_chunk = 256 if (tb >= 512 and tb % 256 == 0) else tb

    kernel = functools.partial(_mlp_kernel, num_layers=num_layers,
                               row_chunk=row_chunk)
    out = pl.pallas_call(
        kernel,
        out_shape=jax.ShapeDtypeStruct((bp, out_cols), orig_dtype),
        grid=grid,
        in_specs=in_specs,
        out_specs=out_specs,
        compiler_params=pltpu.CompilerParams(
            dimension_semantics=("parallel",)),
    )(x, *flat)

    return out[:B, :output_size]


# ----------------------------------------------------------------------------
# Pure-JAX reference for sanity checking.
# ----------------------------------------------------------------------------
def nn_model_ref(params, x, output_size):
    num_layers = len(params)
    for layer in range(num_layers - 1):
        w, b = params[layer]
        x = jnp.maximum(x @ w + b, 0.0)
    w, b = params[-1]
    return (x @ w + b)[:, :output_size]


if __name__ == "__main__":
    # Small shapes consistent with the module:
    #   input_size=32, hidden_size=64, output_size=8
    #   -> num_hidden_layers = log2(64) - 4 = 2
    #   fc1: 32 -> 32 (ReLU), fc2: 32 -> 16 (ReLU), fc3: 16 -> 8
    input_size, hidden_size, output_size = 32, 64, 8

    key = jax.random.PRNGKey(0)
    key, kp = jax.random.split(key)
    params, num_hidden_layers = make_params(
        input_size, hidden_size, output_size, kp)

    # --- check 1: tiny batch, f32, single-tile path (bit-exact vs reference)
    key, kx = jax.random.split(key)
    x_small = jax.random.normal(kx, (8, input_size), dtype=jnp.float32)
    out = jax.block_until_ready(nn_model_forward(params, x_small, output_size))
    ref = nn_model_ref(params, x_small, output_size)
    assert out.shape == (8, output_size), out.shape
    assert jnp.allclose(out, ref, atol=1e-5, rtol=1e-5), "f32 small-batch mismatch"

    # --- check 2: mid batch, f32, 2-step parallel grid (v7x megacore path)
    key, kx2 = jax.random.split(key)
    x_mid = jax.random.normal(kx2, (96, input_size), dtype=jnp.float32)
    out2 = jax.block_until_ready(nn_model_forward(params, x_mid, output_size))
    ref2 = nn_model_ref(params, x_mid, output_size)
    assert out2.shape == (96, output_size), out2.shape
    assert jnp.allclose(out2, ref2, atol=1e-5, rtol=1e-5), "f32 mid-batch mismatch"

    # --- check 3: bf16 I/O with f32 accumulation (looser tolerance vs f32 ref)
    out3 = jax.block_until_ready(
        nn_model_forward(params, x_small, output_size,
                         compute_dtype=jnp.bfloat16))
    assert out3.shape == (8, output_size), out3.shape
    assert jnp.allclose(out3, ref, atol=5e-2, rtol=5e-2), "bf16 path mismatch"

    print("KERNEL_OK")
</pallas_src>

<mosaic_0001>
module attributes {stable_mosaic.version = 11 : i64} {
  func.func @_mlp_kernel(%arg0: i32, %arg1: memref<8x32xf32, #tpu.memory_space<vmem>>, %arg2: memref<32x32xf32, #tpu.memory_space<vmem>>, %arg3: memref<1x32xf32, #tpu.memory_space<vmem>>, %arg4: memref<32x16xf32, #tpu.memory_space<vmem>>, %arg5: memref<1x16xf32, #tpu.memory_space<vmem>>, %arg6: memref<16x128xf32, #tpu.memory_space<vmem>>, %arg7: memref<1x128xf32, #tpu.memory_space<vmem>>, %arg8: memref<8x128xf32, #tpu.memory_space<vmem>>) attributes {dimension_semantics = [#tpu.dimension_semantics<parallel>], iteration_bounds = array<i64: 1>, scalar_prefetch = 0 : i64, scratch_operands = 0 : i64, tpu.core_type = #tpu.core_type<tc>, window_params = [{transform_indices = @transform_0, window_bounds = array<i64: 8, 32>}, {pipeline_mode = #tpu.pipeline_mode<synchronous>, transform_indices = @transform_1, window_bounds = array<i64: 32, 32>}, {pipeline_mode = #tpu.pipeline_mode<synchronous>, transform_indices = @transform_2, window_bounds = array<i64: 1, 32>}, {pipeline_mode = #tpu.pipeline_mode<synchronous>, transform_indices = @transform_3, window_bounds = array<i64: 32, 16>}, {pipeline_mode = #tpu.pipeline_mode<synchronous>, transform_indices = @transform_4, window_bounds = array<i64: 1, 16>}, {pipeline_mode = #tpu.pipeline_mode<synchronous>, transform_indices = @transform_5, window_bounds = array<i64: 16, 128>}, {pipeline_mode = #tpu.pipeline_mode<synchronous>, transform_indices = @transform_6, window_bounds = array<i64: 1, 128>}, {transform_indices = @transform_7, window_bounds = array<i64: 8, 128>}]} {
    %c0 = arith.constant 0 : index
    %c0_0 = arith.constant 0 : index
    %0 = vector.load %arg1[%c0, %c0_0] : memref<8x32xf32, #tpu.memory_space<vmem>>, vector<8x32xf32>
    %c0_1 = arith.constant 0 : index
    %c0_2 = arith.constant 0 : index
    %1 = vector.load %arg2[%c0_1, %c0_2] : memref<32x32xf32, #tpu.memory_space<vmem>>, vector<32x32xf32>
    %c0_3 = arith.constant 0 : index
    %c0_4 = arith.constant 0 : index
    %2 = vector.load %arg3[%c0_3, %c0_4] : memref<1x32xf32, #tpu.memory_space<vmem>>, vector<1x32xf32>
    %cst = arith.constant dense<0.000000e+00> : vector<8x32xf32>
    %3 = tpu.matmul %0, %1, %cst {dimension_numbers = #tpu.dot_dimension_numbers<[1], [0], [0], [1], [0, 0, 1, 1], [], []>} : vector<8x32xf32>, vector<32x32xf32>, vector<8x32xf32> -> vector<8x32xf32>
    %4 = vector.broadcast %2 : vector<1x32xf32> to vector<8x32xf32>
    %5 = arith.addf %3, %4 : vector<8x32xf32>
    %cst_5 = arith.constant 0.000000e+00 : f32
    %6 = vector.broadcast %cst_5 : f32 to vector<8x32xf32>
    %7 = arith.maximumf %5, %6 : vector<8x32xf32>
    %c0_6 = arith.constant 0 : index
    %c0_7 = arith.constant 0 : index
    %8 = vector.load %arg4[%c0_6, %c0_7] : memref<32x16xf32, #tpu.memory_space<vmem>>, vector<32x16xf32>
    %c0_8 = arith.constant 0 : index
    %c0_9 = arith.constant 0 : index
    %9 = vector.load %arg5[%c0_8, %c0_9] : memref<1x16xf32, #tpu.memory_space<vmem>>, vector<1x16xf32>
    %cst_10 = arith.constant dense<0.000000e+00> : vector<8x16xf32>
    %10 = tpu.matmul %7, %8, %cst_10 {dimension_numbers = #tpu.dot_dimension_numbers<[1], [0], [0], [1], [0, 0, 1, 1], [], []>} : vector<8x32xf32>, vector<32x16xf32>, vector<8x16xf32> -> vector<8x16xf32>
    %11 = vector.broadcast %9 : vector<1x16xf32> to vector<8x16xf32>
    %12 = arith.addf %10, %11 : vector<8x16xf32>
    %cst_11 = arith.constant 0.000000e+00 : f32
    %13 = vector.broadcast %cst_11 : f32 to vector<8x16xf32>
    %14 = arith.maximumf %12, %13 : vector<8x16xf32>
    %c0_12 = arith.constant 0 : index
    %c0_13 = arith.constant 0 : index
    %15 = vector.load %arg6[%c0_12, %c0_13] : memref<16x128xf32, #tpu.memory_space<vmem>>, vector<16x128xf32>
    %c0_14 = arith.constant 0 : index
    %c0_15 = arith.constant 0 : index
    %16 = vector.load %arg7[%c0_14, %c0_15] : memref<1x128xf32, #tpu.memory_space<vmem>>, vector<1x128xf32>
    %cst_16 = arith.constant dense<0.000000e+00> : vector<8x128xf32>
    %17 = tpu.matmul %14, %15, %cst_16 {dimension_numbers = #tpu.dot_dimension_numbers<[1], [0], [0], [1], [0, 0, 1, 1], [], []>} : vector<8x16xf32>, vector<16x128xf32>, vector<8x128xf32> -> vector<8x128xf32>
    %18 = vector.broadcast %16 : vector<1x128xf32> to vector<8x128xf32>
    %19 = arith.addf %17, %18 : vector<8x128xf32>
    %c0_17 = arith.constant 0 : index
    %c0_18 = arith.constant 0 : index
    %20 = vector.load %arg8[%c0_17, %c0_18] : memref<8x128xf32, #tpu.memory_space<vmem>>, vector<8x128xf32>
    tpu.vector_store %arg8[%c0_17, %c0_18], %19 {strides = array<i32>} : memref<8x128xf32, #tpu.memory_space<vmem>>, vector<8x128xf32>,
    return
  }
  func.func @transform_0(%arg0: i32) -> (i32, i32) {
    %c0_i32 = arith.constant 0 : i32
    %c0_i32_0 = arith.constant 0 : i32
    return %arg0, %c0_i32 : i32, i32
  }
  func.func @transform_1(%arg0: i32) -> (i32, i32) {
    %c0_i32 = arith.constant 0 : i32
    %c0_i32_0 = arith.constant 0 : i32
    %c0_i32_1 = arith.constant 0 : i32
    return %c0_i32, %c0_i32_0 : i32, i32
  }
  func.func @transform_2(%arg0: i32) -> (i32, i32) {
    %c0_i32 = arith.constant 0 : i32
    %c0_i32_0 = arith.constant 0 : i32
    %c0_i32_1 = arith.constant 0 : i32
    return %c0_i32, %c0_i32_0 : i32, i32
  }
  func.func @transform_3(%arg0: i32) -> (i32, i32) {
    %c0_i32 = arith.constant 0 : i32
    %c0_i32_0 = arith.constant 0 : i32
    %c0_i32_1 = arith.constant 0 : i32
    return %c0_i32, %c0_i32_0 : i32, i32
  }
  func.func @transform_4(%arg0: i32) -> (i32, i32) {
    %c0_i32 = arith.constant 0 : i32
    %c0_i32_0 = arith.constant 0 : i32
    %c0_i32_1 = arith.constant 0 : i32
    return %c0_i32, %c0_i32_0 : i32, i32
  }
  func.func @transform_5(%arg0: i32) -> (i32, i32) {
    %c0_i32 = arith.constant 0 : i32
    %c0_i32_0 = arith.constant 0 : i32
    %c0_i32_1 = arith.constant 0 : i32
    return %c0_i32, %c0_i32_0 : i32, i32
  }
  func.func @transform_6(%arg0: i32) -> (i32, i32) {
    %c0_i32 = arith.constant 0 : i32
    %c0_i32_0 = arith.constant 0 : i32
    %c0_i32_1 = arith.constant 0 : i32
    return %c0_i32, %c0_i32_0 : i32, i32
  }
  func.func @transform_7(%arg0: i32) -> (i32, i32) {
    %c0_i32 = arith.constant 0 : i32
    %c0_i32_0 = arith.constant 0 : i32
    return %arg0, %c0_i32 : i32, i32
  }
}

</mosaic_0001>

<bundles_post_ra>
// kernel: tpu_custom_call.1
= control target key start
LH: loop header
LB: loop body
LE: loop exit
PB: predicated region body
PF: predicated region fallthrough
CT: control target
= control target key end

     0   :  { %12 = vsyncpa [#allocation3], 0  ;;  %s500_s0 = inlined_call_operand.hbm [shape: f32[8,32], index: 0, kind: input, shape index: {}]   ;;  %s501_s1 = inlined_call_operand.vmem [shape: f32[32,32], index: 1, kind: input, shape index: {}]   ;;  %s502_s2 = inlined_call_operand.vmem [shape: f32[1,32], index: 2, kind: input, shape index: {}]   ;;  %s503_s3 = inlined_call_operand.vmem [shape: f32[32,16], index: 3, kind: input, shape index: {}]   ;;  %s504_s4 = inlined_call_operand.vmem [shape: f32[1,16], index: 4, kind: input, shape index: {}]   ;;  %s505_s5 = inlined_call_operand.vmem [shape: f32[16,128], index: 5, kind: input, shape index: {}]   ;;  %s506_s6 = inlined_call_operand.vmem [shape: f32[1,128], index: 6, kind: input, shape index: {}]   ;;  %s507_s7 = inlined_call_operand.hbm [shape: f32[8,128], index: 7, kind: output, shape index: {}]  }
   0x1   :  { %13 = vsyncpa [#allocation4], 0  ;;  %s406_s24 = smov [#allocation2]  }
   0x2   :  { %s20_s25 = sshll.u32 %s406_s24, 4  ;;  %s21_s25 = int_to_ptr.vmem [resolvable:$true] %s20_s25 }
   0x3   :  { %s370_s26 = scalar_lea.vmem %s21_s25, 128  ;;  %p375_p1 = scmp.lt.s32.totalorder %s21_s25, %s21_s25 }
   0x4   :  { %p371_p0 = scmp.ne.s32.totalorder %s21_s25, %s370_s26  ;;  %p376_p2 = scmp.lt.s32.totalorder %s370_s26, %s370_s26 }
   0x6   :  { %p377_p3 = por %p376_p2, %p375_p1 }
   0x8   :  { %p378_p4 = pnand %p377_p3, %p371_p0 }
   0xa   :  { %381 = shalt.err (!%p378_p4)
}
   0xb   :  { %23 = dma.hbm_to_vmem [thread:$0]  %s500_s0, 128, %s21_s25, [#allocation3]  }
   0xc   :  { %402 = dma.done.wait [#allocation3], 128  }
   0xd   :  { %403 = vsyncadd [#allocation3], 4294967168  ;;  %v407_v0 = vmov 0.0   ;;  %vm408_vm0 = vmmov 0   ;;  %v43_v1 = vld [vmem:[%s501_s1 + $0x18] sm:$0xff]  ;;  %v42_v2 = vld [vmem:[%s501_s1 + $0x10] sm:$0xff] }
   0xe   :  { %329 = vmatprep.subr.mxu0 %v407_v0  ;;  %337 = vmatprep.mubr.msk.f32.mxu0 %vm408_vm0, %v407_v0  ;;  %v129_v3 = vld [vmem:[%s503_s3 + $0x18] sm:$0xff]  ;;  %v41_v4 = vld [vmem:[%s501_s1 + $0x8] sm:$0xff]  ;;  %v40_v5 = vld [vmem:[%s501_s1] sm:$0xff]  ;;  %vm51_vm1 = vcmask 261120   ;;  %vm220_vm2 = vcmask 130048   ;;  %s409_s28 = smov [#allocation5]  }
   0xf   :  { %340 = vmatprep.subr.mxu1 %v407_v0  ;;  %348 = vmatprep.mubr.msk.f32.mxu1 %vm408_vm0, %v407_v0  ;;  %v39_v6 = vld [vmem:[#allocation2] sm:$0xff]  ;;  %v128_v7 = vld [vmem:[%s503_s3 + $0x10] sm:$0xff]  ;;  %v127_v8 = vld [vmem:[%s503_s3 + $0x8] sm:$0xff]  ;;  %s301_s29 = sshll.u32 %s409_s28, 4  ;;  %s302_s29 = int_to_ptr.vmem [resolvable:$true] %s301_s29 }
  0x10   :  { %330 = vmatpush3.msra.mxu0 %v43_v1  ;;  %341 = vmatpush3.msra.mxu1 %v129_v3  ;;  %v126_v9 = vld [vmem:[%s503_s3] sm:$0xff]  ;;  %v212_v15 = vld [vmem:[%s505_s5 + $0x8] sm:$0xff]  ;;  %p387_p6 = scmp.lt.s32.totalorder %s302_s29, %s302_s29 }
  0x11   :  { %331 = vmatprep.subr.mxu0 %v407_v0  ;;  %342 = vmatprep.subr.mxu1 %v407_v0  ;;  %v310_v10 = vld [vmem:[%s502_s2] ss:$0 sm:$0xff] }
  0x12   :  { %332 = vmatpush3.msra.mxu0 %v42_v2  ;;  %343 = vmatpush3.msra.mxu1 %v128_v7  ;;  %v211_v16 = vld [vmem:[%s505_s5] sm:$0xff]  ;;  %s382_s5 = scalar_lea.vmem %s302_s29, 128 }
  0x13   :  { %333 = vmatprep.subr.mxu0 %v407_v0  ;;  %344 = vmatprep.subr.mxu1 %v407_v0  ;;  %v312_v17 = vld [vmem:[%s504_s4] ss:$0 sm:$0xff]  ;;  %p383_p5 = scmp.ne.s32.totalorder %s302_s29, %s382_s5  ;;  %p388_p7 = scmp.lt.s32.totalorder %s382_s5, %s382_s5 }
  0x14   :  { %334 = vmatpush3.msra.mxu0 %v41_v4  ;;  %345 = vmatpush3.msra.mxu1 %v127_v8  ;;  %v314_v22 = vld [vmem:[%s506_s6] ss:$0 sm:$0xff] }
  0x15   :  { %335 = vmatprep.subr.mxu0 %v407_v0  ;;  %346 = vmatprep.subr.mxu1 %v407_v0  ;;  %p389_p8 = por %p388_p7, %p387_p6 }
  0x16   :  { %336 = vmatpush3.msra.mxu0 %v40_v5  ;;  %347 = vmatpush3.msra.mxu1 %v126_v9 }
  0x17   :  { %338 = vmatmul.mubr.msk.f32.vlgmr.msra.gmra.mxu0 %vm51_vm1, %v39_v6  ;;  %351 = vmatprep.subr.mxu0 %v407_v0  ;;  %p390_p9 = pnand %p389_p8, %p383_p5 }
  0x18   :  { %355 = vmatprep.mubr.msk.f32.mxu0 %vm408_vm0, %v407_v0  ;;  %352 = vmatpush3.msra.mxu0 %v212_v15 }
  0x19   :  { %353 = vmatprep.subr.mxu0 %v407_v0 }
  0x1a   :  { %354 = vmatpush3.msra.mxu0 %v211_v16 }
  0xd7   :  { %v121_v11 = vpop.f32.mrf.mxu0 }
  0xd8   :  { %v122_v12 = vadd.f32 %v310_v10, %v121_v11 }
  0xd9   :  { %v339_v13 = vpop.f32.mrf.mxu0 }
  0xda   :  { %v125_v14 = vmax.f32 %v122_v12, 0.0 }
  0xdc   :  { %349 = vmatmul.mubr.msk.f32.vlgmr.msra.gmra.mxu1 %vm51_vm1, %v125_v14 }
 0x19c   :  { %v206_v18 = vpop.f32.mrf.mxu1 }
 0x19d   :  { %v207_v19 = vadd.f32 %v312_v17, %v206_v18 }
 0x19e   :  { %v350_v20 = vpop.f32.mrf.mxu1 }
 0x19f   :  { %v210_v21 = vmax.f32 %v207_v19, 0.0 }
 0x1a1   :  { %356 = vmatmul.mubr.msk.f32.vlgmr.msra.gmra.mxu0 %vm220_vm2, %v210_v21 }
 0x261   :  { %v290_v23 = vpop.f32.mrf.mxu0 }
 0x262   :  { %v291_v24 = vadd.f32 %v314_v22, %v290_v23 }
 0x263   :  { %v357_v25 = vpop.f32.mrf.mxu0 }
 0x264   :  { %294 = vst [vmem:[#allocation5] sm:$0xff] %v291_v24 }
 0x265   :  { %393 = shalt.err (!%p390_p9)
}
 0x266   :  { %304 = dma.vmem_to_hbm [thread:$0]  %s302_s29, 128, %s507_s7, [#allocation4]  }
 0x267   :  { %404 = dma.done.wait [#allocation4], 128  }
 0x268   :  { %405 = vsyncadd [#allocation4], 4294967168 }
 0x269   :  { %308 = vsyncpa [#allocation3], 1 }
 0x26a   :  { %309 = vsyncpa [#allocation4], 1 }

</bundles_post_ra>
